<compile_context>
chip_gen: v5e
topology: v5e:2x2
jax: 0.10.0
libtpu: 0.0.40
codegen_flags: <defaults>
</compile_context>

<pallas_src>
import functools
import math

import jax
import jax.numpy as jnp
from jax import lax
from jax.experimental import pallas as pl
from jax.experimental.pallas import tpu as pltpu

_BN_EPS = 1e-5


# ---------------------------------------------------------------------------
# Pallas kernels
# ---------------------------------------------------------------------------
def _conv_stats_kernel(xw_ref, w_ref, mask_ref, z_ref, s_ref, q_ref, *, th, wq, dil):
    """Pass 1: fused dilated 3x3 conv for one row tile (one bf16 MXU matmul)
    plus per-tile per-channel sum / sum-of-squares partials.

    xw_ref:   (Cin_p, Lw)        row-flattened haloed window, bf16
    w_ref:    (Cout_p, 9*Cin_p)  tap-major / channel-minor weights, bf16
    mask_ref: (1, th*wq)         1.0 on valid output columns, 0.0 on padding
    z_ref:    (Cout_p, th*wq)    conv output, f32
    s_ref/q_ref: (Cout_p, 1)     per-tile partial sum / sum-of-squares
    """
    slab = th * wq
    taps = []
    for ky in range(3):
        for kx in range(3):
            off = ky * dil * wq + kx * dil                 # static offsets
            taps.append(xw_ref[:, off:off + slab])         # (Cin_p, slab) bf16
    p = jnp.concatenate(taps, axis=0)                      # (9*Cin_p, slab)
    z = jnp.dot(w_ref[...], p, preferred_element_type=jnp.float32)  # (Cout_p, slab)
    z_ref[...] = z                                         # dense, lane-aligned store
    zm = z * mask_ref[...]                                 # drop garbage columns
    s_ref[...] = jnp.sum(zm, axis=1, keepdims=True)        # one lane reduce per tile
    q_ref[...] = jnp.sum(zm * z, axis=1, keepdims=True)


def _bn_relu_kernel(z_ref, scale_ref, shift_ref, o_ref):
    """Pass 2: elementwise BN affine (precomputed scale/shift) + ReLU over z."""
    o_ref[...] = jnp.maximum(z_ref[...] * scale_ref[...] + shift_ref[...], 0.0)


# ---------------------------------------------------------------------------
# Module wrapper
# ---------------------------------------------------------------------------
def _round_up(v, m):
    return (v + m - 1) // m * m


def _pick_row_tile(h_out):
    for th in (64, 32, 16, 8):
        if h_out % th == 0:
            return th
    return h_out  # single full-extent tile


def _vmem_limit_bytes(per_step_bytes):
    want = max(32 << 20, 4 * per_step_bytes + (8 << 20))
    try:  # per-generation cap: ~54 MiB on v7x (64 MiB phys), ~100 MiB on v5e/v6e
        cap = min(int(pltpu.get_tpu_info().vmem_capacity_bytes * 0.85), 100 << 20)
    except Exception:  # pragma: no cover - conservative fallback
        cap = 48 << 20
    return min(want, cap)


def init_conv_bn_relu_params(key, in_channels, out_channels, kernel_size=3):
    """kaiming_normal conv weight (fan_in, relu gain); default BatchNorm affine."""
    fan_in = in_channels * kernel_size * kernel_size
    w = jax.random.normal(
        key, (out_channels, in_channels, kernel_size, kernel_size), jnp.float32
    ) * jnp.sqrt(2.0 / fan_in)
    return {
        "weight": w,  # (Cout, Cin, KH, KW); conv bias=False (module default)
        "gamma": jnp.ones((out_channels,), jnp.float32),
        "beta": jnp.zeros((out_channels,), jnp.float32),
    }


def conv2d_bn_relu(x_nchw, params, *, stride=1, padding=1, dilation=1, row_tile=None):
    """Conv2DBatchNormRelu forward (train-mode batch statistics). NCHW in/out."""
    # TODO(synk): only the module-default kernel_size=3 / stride=1 path is implemented.
    w = params["weight"]
    gamma = params["gamma"].astype(jnp.float32)
    beta = params["beta"].astype(jnp.float32)
    n, cin, h, win = x_nchw.shape
    cout, cin_w, kh, kw_ = w.shape
    assert (kh, kw_) == (3, 3) and cin_w == cin and stride == 1
    p, d = padding, dilation
    h_out = h + 2 * p - 2 * d
    w_out = win + 2 * p - 2 * d
    assert h_out > 0 and w_out > 0

    th = row_tile if row_tile is not None else _pick_row_tile(h_out)
    assert h_out % th == 0
    n_ht = h_out // th

    cin_p = _round_up(cin, 16)        # bf16 sublane-tile friendly contraction blocks
    cout_p = _round_up(cout, 8)
    # Padded width wq chosen so every flattened row-tile slab (th*wq lanes) is a
    # multiple of 128 -> unmasked, lane-dense loads and stores of z / output.
    wq = _round_up(win + 2 * p, 128 // math.gcd(th, 128))
    slab = th * wq
    rows_w = th + 2 * d               # haloed rows per tile
    lw = _round_up(rows_w * wq + 2 * d, 128)   # +2d: last tap's slab overhang

    # Zero-padded input (channels->cin_p, spatial halo of p, width->wq); bf16 at
    # the MXU boundary (f32 accumulation inside the kernel).
    x_p = jnp.pad(
        x_nchw.astype(jnp.float32),
        ((0, 0), (0, cin_p - cin), (p, p), (p, wq - win - p)),
    ).astype(jnp.bfloat16)
    # Haloed, row-flattened windows: (n, n_ht, cin_p, lw).  Only the 2*d halo rows
    # are duplicated, so each grid step DMAs exactly its own block (pipelined).
    # TODO(synk): for very large images, switch to memory_space=pl.ANY + manual
    # halo DMA to avoid materialising the windowed copy in HBM.
    windows = [x_p[:, :, j * th: j * th + rows_w, :] for j in range(n_ht)]
    xw = jnp.stack(windows, axis=1).reshape(n, n_ht, cin_p, rows_w * wq)
    xw = jnp.pad(xw, ((0, 0), (0, 0), (0, 0), (0, lw - rows_w * wq)))

    # Weights as one lane-dense (Cout_p, 9*Cin_p) matrix, tap-major / channel-minor
    # (matches the in-kernel patch concatenation order).
    w_p = jnp.pad(w.astype(jnp.float32),
                  ((0, cout_p - cout), (0, cin_p - cin), (0, 0), (0, 0)))
    w2 = jnp.transpose(w_p, (0, 2, 3, 1)).reshape(cout_p, 9 * cin_p).astype(jnp.bfloat16)

    # Valid-column mask over one slab (columns x >= w_out are conv garbage).
    mask = jnp.tile((jnp.arange(wq) < w_out).astype(jnp.float32), th).reshape(1, slab)

    grid = (n, n_ht)
    xw_spec = pl.BlockSpec((None, None, cin_p, lw), lambda i, j: (i, j, 0, 0))
    w_spec = pl.BlockSpec((cout_p, 9 * cin_p), lambda i, j: (0, 0))
    mask_spec = pl.BlockSpec((1, slab), lambda i, j: (0, 0))
    z_spec = pl.BlockSpec((None, cout_p, slab), lambda i, j: (i, 0, j))
    part_spec = pl.BlockSpec((None, None, cout_p, 1), lambda i, j: (i, j, 0, 0))

    conv_flops = 2 * n * n_ht * cout_p * slab * 9 * cin_p
    per_step_bytes = (cin_p * lw * 2 + cout_p * 9 * cin_p * 2 + slab * 4
                      + cout_p * slab * 4 + 9 * cin_p * slab * 2)
    vmem_limit = _vmem_limit_bytes(per_step_bytes)

    # ---- pass 1: fused conv + per-tile channel stats (both axes parallel) ----
    z, s_part, q_part = pl.pallas_call(
        functools.partial(_conv_stats_kernel, th=th, wq=wq, dil=d),
        grid=grid,
        in_specs=[xw_spec, w_spec, mask_spec],
        out_specs=[z_spec, part_spec, part_spec],
        out_shape=[jax.ShapeDtypeStruct((n, cout_p, h_out * wq), jnp.float32),
                   jax.ShapeDtypeStruct((n, n_ht, cout_p, 1), jnp.float32),
                   jax.ShapeDtypeStruct((n, n_ht, cout_p, 1), jnp.float32)],
        compiler_params=pltpu.CompilerParams(
            dimension_semantics=("parallel", "parallel"),
            vmem_limit_bytes=vmem_limit),
        cost_estimate=pl.CostEstimate(
            flops=conv_flops, transcendentals=0,
            bytes_accessed=xw.size * 2 + w2.size * 2 + n * cout_p * h_out * wq * 4),
    )(xw, w2, mask)

    # Fold the per-tile partial stats (tiny XLA reduction) into BN scale/shift.
    # NOTE: var = E[z^2] - E[z]^2 in f32; fine for kaiming-init convs (near-zero
    # mean); clamp guards tiny negative round-off.
    m_total = float(n * h_out * w_out)
    mean = jnp.sum(s_part, axis=(0, 1)) / m_total            # (cout_p, 1)
    var = jnp.maximum(jnp.sum(q_part, axis=(0, 1)) / m_total - mean * mean, 0.0)
    inv = lax.rsqrt(var + _BN_EPS)
    gamma_p = jnp.pad(gamma, (0, cout_p - cout), constant_values=1.0).reshape(cout_p, 1)
    beta_p = jnp.pad(beta, (0, cout_p - cout)).reshape(cout_p, 1)
    scale = gamma_p * inv
    shift = beta_p - mean * scale

    # ---- pass 2: elementwise BN affine + ReLU over stored z (aliased in-place) ----
    # TODO(synk): on v5e with tiny cin*cout a conv-recompute pass 2 (no z HBM
    # round-trip) and/or a bf16 z intermediate can be cheaper; config switch.
    out_flat = pl.pallas_call(
        _bn_relu_kernel,
        grid=grid,
        in_specs=[z_spec,
                  pl.BlockSpec((cout_p, 1), lambda i, j: (0, 0)),
                  pl.BlockSpec((cout_p, 1), lambda i, j: (0, 0))],
        out_specs=z_spec,
        out_shape=jax.ShapeDtypeStruct((n, cout_p, h_out * wq), jnp.float32),
        input_output_aliases={0: 0},
        compiler_params=pltpu.CompilerParams(
            dimension_semantics=("parallel", "parallel"),
            vmem_limit_bytes=vmem_limit),
        cost_estimate=pl.CostEstimate(
            flops=2 * n * cout_p * h_out * wq, transcendentals=0,
            bytes_accessed=2 * n * cout_p * h_out * wq * 4),
    )(z, scale, shift)

    # Free reshape + cheap slice in XLA to drop channel / width padding.
    out = out_flat.reshape(n, cout_p, h_out, wq)[:, :cout, :, :w_out]
    return out


# ---------------------------------------------------------------------------
# Pure-JAX reference (correctness check)
# ---------------------------------------------------------------------------
def conv2d_bn_relu_ref(x_nchw, params, *, stride=1, padding=1, dilation=1):
    w = params["weight"]
    gamma = params["gamma"]
    beta = params["beta"]
    p, d = padding, dilation
    dn = lax.conv_dimension_numbers(x_nchw.shape, w.shape, ("NCHW", "OIHW", "NCHW"))
    z = lax.conv_general_dilated(
        x_nchw.astype(jnp.float32), w.astype(jnp.float32),
        window_strides=(stride, stride), padding=[(p, p), (p, p)],
        rhs_dilation=(d, d), dimension_numbers=dn,
        precision=lax.Precision.HIGHEST)
    mean = jnp.mean(z, axis=(0, 2, 3), keepdims=True)
    var = jnp.mean((z - mean) ** 2, axis=(0, 2, 3), keepdims=True)
    y = (z - mean) * lax.rsqrt(var + _BN_EPS)
    y = y * gamma.reshape(1, -1, 1, 1) + beta.reshape(1, -1, 1, 1)
    return jnp.maximum(y, 0.0)


if __name__ == "__main__":
    key = jax.random.PRNGKey(0)
    k_x, k_w = jax.random.split(key)

    N, CIN, COUT, H, W = 2, 4, 8, 16, 16

    x = jax.random.normal(k_x, (N, CIN, H, W), jnp.float32)
    params = init_conv_bn_relu_params(k_w, CIN, COUT)

    # row_tile=8 -> 2 row tiles per image: exercises the cross-tile BN reduction.
    fwd = jax.jit(functools.partial(conv2d_bn_relu, row_tile=8))
    out = jax.block_until_ready(fwd(x, params))
    assert out.shape == (N, COUT, H, W)

    # Tight check vs a reference fed the same bf16-quantised inputs the MXU sees.
    x_q = x.astype(jnp.bfloat16).astype(jnp.float32)
    params_q = dict(params,
                    weight=params["weight"].astype(jnp.bfloat16).astype(jnp.float32))
    ref_q = conv2d_bn_relu_ref(x_q, params_q)
    assert jnp.allclose(out, ref_q, rtol=2e-3, atol=2e-3), (
        "mismatch vs bf16-quantised reference: max |err| = "
        f"{jnp.max(jnp.abs(out - ref_q)):.3e}")

    # Looser check vs the pure-f32 module semantics (bf16 MXU inputs -> ~1e-2).
    ref = conv2d_bn_relu_ref(x, params)
    assert jnp.allclose(out, ref, rtol=3e-2, atol=3e-2), (
        "mismatch vs f32 reference: max |err| = "
        f"{jnp.max(jnp.abs(out - ref)):.3e}")

    print("KERNEL_OK")
</pallas_src>

<mosaic_0001>
module attributes {stable_mosaic.version = 11 : i64} {
  func.func @_conv_stats_kernel(%arg0: i32, %arg1: i32, %arg2: memref<1x1x16x384xbf16, #tpu.memory_space<vmem>>, %arg3: memref<8x144xbf16, #tpu.memory_space<vmem>>, %arg4: memref<1x256xf32, #tpu.memory_space<vmem>>, %arg5: memref<1x8x256xf32, #tpu.memory_space<vmem>>, %arg6: memref<1x1x8x1xf32, #tpu.memory_space<vmem>>, %arg7: memref<1x1x8x1xf32, #tpu.memory_space<vmem>>) attributes {dimension_semantics = [#tpu.dimension_semantics<parallel>, #tpu.dimension_semantics<parallel>], iteration_bounds = array<i64: 2, 2>, scalar_prefetch = 0 : i64, scratch_operands = 0 : i64, tpu.core_type = #tpu.core_type<tc>, window_params = [{transform_indices = @transform_0, window_bounds = array<i64: 1, 1, 16, 384>}, {pipeline_mode = #tpu.pipeline_mode<synchronous>, transform_indices = @transform_1, window_bounds = array<i64: 8, 144>}, {pipeline_mode = #tpu.pipeline_mode<synchronous>, transform_indices = @transform_2, window_bounds = array<i64: 1, 256>}, {transform_indices = @transform_3, window_bounds = array<i64: 1, 8, 256>}, {transform_indices = @transform_4, window_bounds = array<i64: 1, 1, 8, 1>}, {transform_indices = @transform_5, window_bounds = array<i64: 1, 1, 8, 1>}]} {
    %c0 = arith.constant 0 : index
    %c0_0 = arith.constant 0 : index
    %c0_1 = arith.constant 0 : index
    %c0_2 = arith.constant 0 : index
    %0 = vector.load %arg2[%c0, %c0_0, %c0_1, %c0_2] : memref<1x1x16x384xbf16, #tpu.memory_space<vmem>>, vector<1x1x16x256xbf16>
    %1 = vector.shape_cast %0 : vector<1x1x16x256xbf16> to vector<16x256xbf16>
    %c0_3 = arith.constant 0 : index
    %c0_4 = arith.constant 0 : index
    %c0_5 = arith.constant 0 : index
    %c1 = arith.constant 1 : index
    %2 = vector.load %arg2[%c0_3, %c0_4, %c0_5, %c1] : memref<1x1x16x384xbf16, #tpu.memory_space<vmem>>, vector<1x1x16x256xbf16>
    %3 = vector.shape_cast %2 : vector<1x1x16x256xbf16> to vector<16x256xbf16>
    %c0_6 = arith.constant 0 : index
    %c0_7 = arith.constant 0 : index
    %c0_8 = arith.constant 0 : index
    %c2 = arith.constant 2 : index
    %4 = vector.load %arg2[%c0_6, %c0_7, %c0_8, %c2] : memref<1x1x16x384xbf16, #tpu.memory_space<vmem>>, vector<1x1x16x256xbf16>
    %5 = vector.shape_cast %4 : vector<1x1x16x256xbf16> to vector<16x256xbf16>
    %c0_9 = arith.constant 0 : index
    %c0_10 = arith.constant 0 : index
    %c0_11 = arith.constant 0 : index
    %c32 = arith.constant 32 : index
    %6 = vector.load %arg2[%c0_9, %c0_10, %c0_11, %c32] : memref<1x1x16x384xbf16, #tpu.memory_space<vmem>>, vector<1x1x16x256xbf16>
    %7 = vector.shape_cast %6 : vector<1x1x16x256xbf16> to vector<16x256xbf16>
    %c0_12 = arith.constant 0 : index
    %c0_13 = arith.constant 0 : index
    %c0_14 = arith.constant 0 : index
    %c33 = arith.constant 33 : index
    %8 = vector.load %arg2[%c0_12, %c0_13, %c0_14, %c33] : memref<1x1x16x384xbf16, #tpu.memory_space<vmem>>, vector<1x1x16x256xbf16>
    %9 = vector.shape_cast %8 : vector<1x1x16x256xbf16> to vector<16x256xbf16>
    %c0_15 = arith.constant 0 : index
    %c0_16 = arith.constant 0 : index
    %c0_17 = arith.constant 0 : index
    %c34 = arith.constant 34 : index
    %10 = vector.load %arg2[%c0_15, %c0_16, %c0_17, %c34] : memref<1x1x16x384xbf16, #tpu.memory_space<vmem>>, vector<1x1x16x256xbf16>
    %11 = vector.shape_cast %10 : vector<1x1x16x256xbf16> to vector<16x256xbf16>
    %c0_18 = arith.constant 0 : index
    %c0_19 = arith.constant 0 : index
    %c0_20 = arith.constant 0 : index
    %c64 = arith.constant 64 : index
    %12 = vector.load %arg2[%c0_18, %c0_19, %c0_20, %c64] : memref<1x1x16x384xbf16, #tpu.memory_space<vmem>>, vector<1x1x16x256xbf16>
    %13 = vector.shape_cast %12 : vector<1x1x16x256xbf16> to vector<16x256xbf16>
    %c0_21 = arith.constant 0 : index
    %c0_22 = arith.constant 0 : index
    %c0_23 = arith.constant 0 : index
    %c65 = arith.constant 65 : index
    %14 = vector.load %arg2[%c0_21, %c0_22, %c0_23, %c65] : memref<1x1x16x384xbf16, #tpu.memory_space<vmem>>, vector<1x1x16x256xbf16>
    %15 = vector.shape_cast %14 : vector<1x1x16x256xbf16> to vector<16x256xbf16>
    %c0_24 = arith.constant 0 : index
    %c0_25 = arith.constant 0 : index
    %c0_26 = arith.constant 0 : index
    %c66 = arith.constant 66 : index
    %16 = vector.load %arg2[%c0_24, %c0_25, %c0_26, %c66] : memref<1x1x16x384xbf16, #tpu.memory_space<vmem>>, vector<1x1x16x256xbf16>
    %17 = vector.shape_cast %16 : vector<1x1x16x256xbf16> to vector<16x256xbf16>
    %18 = tpu.concatenate %1, %3, %5, %7, %9, %11, %13, %15, %17 in 0 : vector<16x256xbf16>, vector<16x256xbf16>, vector<16x256xbf16>, vector<16x256xbf16>, vector<16x256xbf16>, vector<16x256xbf16>, vector<16x256xbf16>, vector<16x256xbf16>, vector<16x256xbf16> -> vector<144x256xbf16>
    %c0_27 = arith.constant 0 : index
    %c0_28 = arith.constant 0 : index
    %19 = vector.load %arg3[%c0_27, %c0_28] : memref<8x144xbf16, #tpu.memory_space<vmem>>, vector<8x144xbf16>
    %cst = arith.constant dense<0.000000e+00> : vector<8x256xf32>
    %20 = tpu.matmul %19, %18, %cst {dimension_numbers = #tpu.dot_dimension_numbers<[1], [0], [0], [1], [0, 0, 1, 1], [], []>} : vector<8x144xbf16>, vector<144x256xbf16>, vector<8x256xf32> -> vector<8x256xf32>
    %c0_29 = arith.constant 0 : index
    %c0_30 = arith.constant 0 : index
    %c0_31 = arith.constant 0 : index
    %21 = vector.load %arg5[%c0_29, %c0_30, %c0_31] : memref<1x8x256xf32, #tpu.memory_space<vmem>>, vector<1x8x256xf32>
    %22 = vector.shape_cast %21 : vector<1x8x256xf32> to vector<8x256xf32>
    %23 = vector.shape_cast %20 : vector<8x256xf32> to vector<1x8x256xf32>
    tpu.vector_store %arg5[%c0_29, %c0_30, %c0_31], %23 {strides = array<i32>} : memref<1x8x256xf32, #tpu.memory_space<vmem>>, vector<1x8x256xf32>,
    %c0_32 = arith.constant 0 : index
    %c0_33 = arith.constant 0 : index
    %24 = vector.load %arg4[%c0_32, %c0_33] : memref<1x256xf32, #tpu.memory_space<vmem>>, vector<1x256xf32>
    %25 = vector.broadcast %24 : vector<1x256xf32> to vector<8x256xf32>
    %26 = arith.mulf %20, %25 : vector<8x256xf32>
    %cst_34 = arith.constant dense<0.000000e+00> : vector<8xf32>
    %27 = vector.multi_reduction <add>, %26, %cst_34 [1] : vector<8x256xf32> to vector<8xf32>
    %28 = vector.shape_cast %27 : vector<8xf32> to vector<8x1xf32>
    %c0_35 = arith.constant 0 : index
    %c0_36 = arith.constant 0 : index
    %c0_37 = arith.constant 0 : index
    %c0_38 = arith.constant 0 : index
    %29 = vector.load %arg6[%c0_35, %c0_36, %c0_37, %c0_38] : memref<1x1x8x1xf32, #tpu.memory_space<vmem>>, vector<1x1x8x1xf32>
    %30 = vector.shape_cast %29 : vector<1x1x8x1xf32> to vector<8x1xf32>
    %31 = vector.shape_cast %28 : vector<8x1xf32> to vector<1x1x8x1xf32>
    tpu.vector_store %arg6[%c0_35, %c0_36, %c0_37, %c0_38], %31 {strides = array<i32>} : memref<1x1x8x1xf32, #tpu.memory_space<vmem>>, vector<1x1x8x1xf32>,
    %32 = arith.mulf %26, %20 : vector<8x256xf32>
    %cst_39 = arith.constant dense<0.000000e+00> : vector<8xf32>
    %33 = vector.multi_reduction <add>, %32, %cst_39 [1] : vector<8x256xf32> to vector<8xf32>
    %34 = vector.shape_cast %33 : vector<8xf32> to vector<8x1xf32>
    %c0_40 = arith.constant 0 : index
    %c0_41 = arith.constant 0 : index
    %c0_42 = arith.constant 0 : index
    %c0_43 = arith.constant 0 : index
    %35 = vector.load %arg7[%c0_40, %c0_41, %c0_42, %c0_43] : memref<1x1x8x1xf32, #tpu.memory_space<vmem>>, vector<1x1x8x1xf32>
    %36 = vector.shape_cast %35 : vector<1x1x8x1xf32> to vector<8x1xf32>
    %37 = vector.shape_cast %34 : vector<8x1xf32> to vector<1x1x8x1xf32>
    tpu.vector_store %arg7[%c0_40, %c0_41, %c0_42, %c0_43], %37 {strides = array<i32>} : memref<1x1x8x1xf32, #tpu.memory_space<vmem>>, vector<1x1x8x1xf32>,
    return
  }
  func.func @transform_0(%arg0: i32, %arg1: i32) -> (i32, i32, i32, i32) {
    %c0_i32 = arith.constant 0 : i32
    %c0_i32_0 = arith.constant 0 : i32
    %c0_i32_1 = arith.constant 0 : i32
    return %arg0, %arg1, %c0_i32, %c0_i32_0 : i32, i32, i32, i32
  }
  func.func @transform_1(%arg0: i32, %arg1: i32) -> (i32, i32) {
    %c0_i32 = arith.constant 0 : i32
    %c0_i32_0 = arith.constant 0 : i32
    %c0_i32_1 = arith.constant 0 : i32
    return %c0_i32, %c0_i32_0 : i32, i32
  }
  func.func @transform_2(%arg0: i32, %arg1: i32) -> (i32, i32) {
    %c0_i32 = arith.constant 0 : i32
    %c0_i32_0 = arith.constant 0 : i32
    %c0_i32_1 = arith.constant 0 : i32
    return %c0_i32, %c0_i32_0 : i32, i32
  }
  func.func @transform_3(%arg0: i32, %arg1: i32) -> (i32, i32, i32) {
    %c0_i32 = arith.constant 0 : i32
    %c0_i32_0 = arith.constant 0 : i32
    return %arg0, %c0_i32, %arg1 : i32, i32, i32
  }
  func.func @transform_4(%arg0: i32, %arg1: i32) -> (i32, i32, i32, i32) {
    %c0_i32 = arith.constant 0 : i32
    %c0_i32_0 = arith.constant 0 : i32
    %c0_i32_1 = arith.constant 0 : i32
    return %arg0, %arg1, %c0_i32, %c0_i32_0 : i32, i32, i32, i32
  }
  func.func @transform_5(%arg0: i32, %arg1: i32) -> (i32, i32, i32, i32) {
    %c0_i32 = arith.constant 0 : i32
    %c0_i32_0 = arith.constant 0 : i32
    %c0_i32_1 = arith.constant 0 : i32
    return %arg0, %arg1, %c0_i32, %c0_i32_0 : i32, i32, i32, i32
  }
}

module attributes {stable_mosaic.version = 11 : i64} {
  func.func @_bn_relu_kernel(%arg0: i32, %arg1: i32, %arg2: memref<1x8x256xf32, #tpu.memory_space<vmem>>, %arg3: memref<8x1xf32, #tpu.memory_space<vmem>>, %arg4: memref<8x1xf32, #tpu.memory_space<vmem>>, %arg5: memref<1x8x256xf32, #tpu.memory_space<vmem>>) attributes {dimension_semantics = [#tpu.dimension_semantics<parallel>, #tpu.dimension_semantics<parallel>], iteration_bounds = array<i64: 2, 2>, scalar_prefetch = 0 : i64, scratch_operands = 0 : i64, tpu.core_type = #tpu.core_type<tc>, window_params = [{transform_indices = @transform_0, window_bounds = array<i64: 1, 8, 256>}, {pipeline_mode = #tpu.pipeline_mode<synchronous>, transform_indices = @transform_1, window_bounds = array<i64: 8, 1>}, {pipeline_mode = #tpu.pipeline_mode<synchronous>, transform_indices = @transform_2, window_bounds = array<i64: 8, 1>}, {transform_indices = @transform_3, window_bounds = array<i64: 1, 8, 256>}]} {
    %c0 = arith.constant 0 : index
    %c0_0 = arith.constant 0 : index
    %c0_1 = arith.constant 0 : index
    %0 = vector.load %arg2[%c0, %c0_0, %c0_1] : memref<1x8x256xf32, #tpu.memory_space<vmem>>, vector<1x8x256xf32>
    %1 = vector.shape_cast %0 : vector<1x8x256xf32> to vector<8x256xf32>
    %c0_2 = arith.constant 0 : index
    %c0_3 = arith.constant 0 : index
    %2 = vector.load %arg3[%c0_2, %c0_3] : memref<8x1xf32, #tpu.memory_space<vmem>>, vector<8x1xf32>
    %3 = vector.broadcast %2 : vector<8x1xf32> to vector<8x256xf32>
    %4 = arith.mulf %1, %3 : vector<8x256xf32>
    %c0_4 = arith.constant 0 : index
    %c0_5 = arith.constant 0 : index
    %5 = vector.load %arg4[%c0_4, %c0_5] : memref<8x1xf32, #tpu.memory_space<vmem>>, vector<8x1xf32>
    %6 = vector.broadcast %5 : vector<8x1xf32> to vector<8x256xf32>
    %7 = arith.addf %4, %6 : vector<8x256xf32>
    %cst = arith.constant 0.000000e+00 : f32
    %8 = vector.broadcast %cst : f32 to vector<8x256xf32>
    %9 = arith.maximumf %7, %8 : vector<8x256xf32>
    %c0_6 = arith.constant 0 : index
    %c0_7 = arith.constant 0 : index
    %c0_8 = arith.constant 0 : index
    %10 = vector.load %arg5[%c0_6, %c0_7, %c0_8] : memref<1x8x256xf32, #tpu.memory_space<vmem>>, vector<1x8x256xf32>
    %11 = vector.shape_cast %10 : vector<1x8x256xf32> to vector<8x256xf32>
    %12 = vector.shape_cast %9 : vector<8x256xf32> to vector<1x8x256xf32>
    tpu.vector_store %arg5[%c0_6, %c0_7, %c0_8], %12 {strides = array<i32>} : memref<1x8x256xf32, #tpu.memory_space<vmem>>, vector<1x8x256xf32>,
    return
  }
  func.func @transform_0(%arg0: i32, %arg1: i32) -> (i32, i32, i32) {
    %c0_i32 = arith.constant 0 : i32
    %c0_i32_0 = arith.constant 0 : i32
    return %arg0, %c0_i32, %arg1 : i32, i32, i32
  }
  func.func @transform_1(%arg0: i32, %arg1: i32) -> (i32, i32) {
    %c0_i32 = arith.constant 0 : i32
    %c0_i32_0 = arith.constant 0 : i32
    %c0_i32_1 = arith.constant 0 : i32
    return %c0_i32, %c0_i32_0 : i32, i32
  }
  func.func @transform_2(%arg0: i32, %arg1: i32) -> (i32, i32) {
    %c0_i32 = arith.constant 0 : i32
    %c0_i32_0 = arith.constant 0 : i32
    %c0_i32_1 = arith.constant 0 : i32
    return %c0_i32, %c0_i32_0 : i32, i32
  }
  func.func @transform_3(%arg0: i32, %arg1: i32) -> (i32, i32, i32) {
    %c0_i32 = arith.constant 0 : i32
    %c0_i32_0 = arith.constant 0 : i32
    return %arg0, %c0_i32, %arg1 : i32, i32, i32
  }
}

</mosaic_0001>

<bundles_post_ra>
// kernel: tile.8
= control target key start
LH: loop header
LB: loop body
LE: loop exit
PB: predicated region body
PF: predicated region fallthrough
CT: control target
= control target key end

     0   :  { %s22_s0 = inlined_call_operand.vmem [shape: f32[32], index: 0, kind: input, shape index: {}]   ;;  %s23_s1 = inlined_call_operand.vmem [shape: f32[8,32], index: 1, kind: output, shape index: {}]  }
   0x1   :  { %v4_v0 = vld [vmem:[%s22_s0] ss:$0 sm:$0xff] }
   0x2   :  { %5 = vst [vmem:[%s23_s1] sm:$0xff] %v4_v0 }

// kernel: tile.9
= control target key start
LH: loop header
LB: loop body
LE: loop exit
PB: predicated region body
PF: predicated region fallthrough
CT: control target
= control target key end

     0   :  { %s7_s6 = smov 3  ;;  %s46_s9 = smov 96   ;;  %vm4_vm0 = vcmask 261120   ;;  %vm11_vm1 = vcmask 1048320   ;;  %vm18_vm2 = vcmask 785920   ;;  %vm25_vm3 = vcmask 523520   ;;  %s77_s0 = inlined_call_operand.vmem [shape: f32[8,32], index: 0, kind: input, shape index: {}]   ;;  %s78_s1 = inlined_call_operand.vmem [shape: f32[1,256], index: 1, kind: output, shape index: {}]  }
   0x1   :  { %v39_v0 = vld [vmem:[%s77_s0 + $0x3] ss:$4 sm:%s7_s6]   ;;  %s21_s10 = smov 3  ;;  %s14_s13 = smov 3 }
   0x2   :  { %9 = vrot.lane.b32.xlu0 %v39_v0, %s46_s9  ;;  %v41_v1 = vld [vmem:[%s77_s0 + $0x1] ss:$4 sm:%s21_s10]   ;;  %s47_s14 = smov 32   ;;  %s48_s17 = smov 64  }
   0x3   :  { %23 = vrot.lane.b32.xlu1 %v41_v1, %s47_s14  ;;  %v40_v2 = vld [vmem:[%s77_s0 + $0x2] ss:$4 sm:%s14_s13]   ;;  %s2_s18 = smov 3 }
   0x4   :  { %v3_v3 = vld [vmem:[%s77_s0] ss:$4 sm:%s2_s18]  }
   0x5   :  { %5 = vst.msk [vmem:[#allocation0] ss:$8 sm:$0x3] %vm4_vm0, %v3_v3  }
   0xa   :  { %16 = vrot.lane.b32.xlu0 %v40_v2, %s48_s17 }
  0x74   :  { %v10_v4 = vpop.permute.xlu0 %9  }
  0x75   :  { %12 = vst.msk [vmem:[#allocation0] ss:$8 sm:$0x3] %vm11_vm1, %v10_v4   ;;  %v24_v5 = vpop.permute.xlu1 %23  }
  0x7c   :  { %v17_v6 = vpop.permute.xlu0 %16  }
  0x7d   :  { %19 = vst.msk [vmem:[#allocation0] ss:$8 sm:$0x3] %vm18_vm2, %v17_v6  }
  0x7e   :  { %26 = vst.msk [vmem:[#allocation0] ss:$8 sm:$0x3] %vm25_vm3, %v24_v5  }
  0x85   :  { %v29_v7 = vld [vmem:[#allocation0] sm:$0x1]  ;;  %v34_v8 = vld [vmem:[#allocation0 + $0x8] sm:$0x1] }
  0x86   :  { %32 = vst [vmem:[%s78_s1] sm:$0x1] %v29_v7 }
  0x87   :  { %42 = vst [vmem:[%s78_s1 + $0x1] sm:$0x1] %v34_v8 }

// kernel: conv2d_bn_relu.3
= control target key start
LH: loop header
LB: loop body
LE: loop exit
PB: predicated region body
PF: predicated region fallthrough
CT: control target
= control target key end

     0   :  { %s438_s12 = smov 0   ;;  %s440_s13 = smov 0   ;;  %s495_s0 = inlined_call_operand.vmem [shape: f32[2,8,512], index: 0, kind: input, shape index: {}, may-alias: {0,3}]   ;;  %s496_s1 = inlined_call_operand.vmem [shape: f32[8,1], index: 1, kind: input, shape index: {}]   ;;  %s497_s2 = inlined_call_operand.vmem [shape: f32[8,1], index: 2, kind: input, shape index: {}]   ;;  %s498_s3 = inlined_call_operand.vmem [shape: f32[2,8,512], index: 3, kind: output, shape index: {}, may-alias: {0,3}]  }
   0x1   :  { %s442_s14 = smov 0   ;;  %s444_s15 = smov 0  }
   0x2   :  { %s446_s16 = smov 0  }
   0x3 LB: > { %s22_s17 = sadd.s32 1, %s407_s14  ;;  %s25_s18 = sadd.s32 1, %s411_s15  ;;  %s415_s16 = sphi %s446_s16, %s13_s16   ;;  %s411_s15 = sphi %s444_s15, %s502_s15   ;;  %s407_s14 = sphi %s442_s14, %s501_s14   ;;  %s403_s13 = sphi %s440_s13, %s500_s13   ;;  %s399_s12 = sphi %s438_s12, %s499_s12  }
   0x4   : > { %p23_p0 = scmp.ge.s32.totalorder %s22_s17, 2  ;;  %p326_p1 = scmp.ge.s32.totalorder %s415_s16, 1 }
   0x5   : > { %p158_p2 = scmp.lt.s32.totalorder %s415_s16, 5 }
   0x6   : > { %s504_s17 = smov (%p23_p0, %s22_s17), 0  ;;  %s506_s18 = smov (!%p23_p0, %s25_s18), %s411_s15 }
   0x7   : > { %p159_p3 = pnand %p326_p1, %p158_p2  ;;  %p27_p4 = scmp.ge.s32.totalorder %s506_s18, 2 }
   0x8   : > { %s327_s23 = sshll.u32 (!%p159_p3), %s399_s12, 1  ;;  %p191_p5 = scmp.lt.s32.totalorder (!%p159_p3), %s403_s13, 1 }
   0x9   : > { %s508_s18 = smov (%p27_p4, %s506_s18), 0  ;;  %162 = sbr.rel (%p159_p3) target bundleno = 145 (0x91), region = 32 }
   0xa   : > { %p193_p6 = scmp.lt.s32.totalorder (!%p159_p3), %s327_s23, 3 }
   0xe   : > { %v212_v0 = vld [vmem:[%s496_s1] sm:$0xff]  ;;  %v417_v1 = vmov 0   ;;  %s510_s13 = smov (!%p191_p5, %s403_s13), 1  ;;  %s512_s23 = smov (!%p193_p6, %s327_s23), 3 }
   0xf   : > { %376 = vset.pattern.permute.xlu0 %v417_v1  ;;  %v220_v2 = vld [vmem:[%s497_s2] sm:$0xff]  ;;  %s328_s24 = sshll.u32 %s510_s13, 2 }
  0x10   : > { %215 = vperm.xlu0 %376, %v212_v0   ;;  %s196_s25 = sadd.s32 %s328_s24, %s512_s23 }
  0x11   : > { %s329_s26 = sshll.u32 %s196_s25, 3 }
  0x12   : > { %s198_s29 = scalar_lea.vmem %s495_s0, %s329_s26  ;;  %s208_s5 = scalar_lea.vmem %s498_s3, %s329_s26 }
  0x13   : > { %v210_v4 = vld [vmem:[%s198_s29] sm:$0xff]  ;;  %v211_v5 = vld [vmem:[%s198_s29 + $0x8] sm:$0xff] }
  0x18   : > { %223 = vperm.xlu0 %376, %v220_v2  }
  0x82   : > { %v216_v3 = vpop.permute.xlu0 %215 }
  0x83   : > { %v218_v6 = vmul.f32 %v216_v3, %v210_v4  ;;  %v219_v7 = vmul.f32 %v216_v3, %v211_v5 }
  0x8a   : > { %v224_v8 = vpop.permute.xlu0 %223 }
  0x8b   : > { %v226_v9 = vadd.f32 %v224_v8, %v218_v6  ;;  %v227_v10 = vadd.f32 %v224_v8, %v219_v7 }
  0x8d   : > { %v228_v11 = vmax.f32 %v226_v9, 0.0  ;;  %v229_v12 = vmax.f32 %v227_v10, 0.0 }
  0x8f   : > { %230 = vst [vmem:[%s208_s5] sm:$0xff] %v228_v11 }
  0x90   : > { %231 = vst [vmem:[%s208_s5 + $0x8] sm:$0xff] %v229_v12 }
  0x91 PF: > { %s13_s16 = sadd.s32 1, %s415_s16   ;;  %s499_s12 = smov %s407_s14 }
  0x92   : > { %p10_p7 = scmp.ge.s32.totalorder %s13_s16, 6   ;;  %s500_s13 = smov %s411_s15 }
  0x93   : > { %s501_s14 = smov %s504_s17  ;;  %s502_s15 = smov %s508_s18 }
  0x94   :  { %12 = sbr.rel (!%p10_p7) target bundleno = 3 (0x3), region = 62 }

// kernel: conv2d_bn_relu.2
= control target key start
LH: loop header
LB: loop body
LE: loop exit
PB: predicated region body
PF: predicated region fallthrough
CT: control target
= control target key end

     0   :  { %s862_s18 = smov 0   ;;  %s864_s19 = smov 0   ;;  %s959_s0 = inlined_call_operand.vmem [shape: bf16[2,2,16,384], index: 0, kind: input, shape index: {}]   ;;  %s960_s1 = inlined_call_operand.vmem [shape: bf16[8,144], index: 1, kind: input, shape index: {}]   ;;  %s961_s2 = inlined_call_operand.vmem [shape: f32[1,256], index: 2, kind: input, shape index: {}]   ;;  %s962_s3 = inlined_call_operand.vmem [shape: f32[2,8,512], index: 3, kind: output, shape index: {0}]   ;;  %s963_s4 = inlined_call_operand.vmem [shape: f32[2,2,8,1], index: 4, kind: output, shape index: {1}]   ;;  %s964_s5 = inlined_call_operand.vmem [shape: f32[2,2,8,1], index: 5, kind: output, shape index: {2}]  }
   0x1   :  { %s866_s20 = smov 0   ;;  %s868_s21 = smov 0  }
   0x2   :  { %s870_s22 = smov 0  }
   0x3 LB: > { %s25_s23 = sadd.s32 1, %s814_s20  ;;  %s28_s24 = sadd.s32 1, %s818_s21  ;;  %s822_s22 = sphi %s870_s22, %s16_s22   ;;  %s818_s21 = sphi %s868_s21, %s968_s21   ;;  %s814_s20 = sphi %s866_s20, %s967_s20   ;;  %s810_s19 = sphi %s864_s19, %s966_s19   ;;  %s806_s18 = sphi %s862_s18, %s965_s18  }
   0x4   : > { %p26_p0 = scmp.ge.s32.totalorder %s25_s23, 2  ;;  %p696_p1 = scmp.ge.s32.totalorder %s822_s22, 1 }
   0x5   : > { %p216_p2 = scmp.lt.s32.totalorder %s822_s22, 5 }
   0x6   : > { %s970_s23 = smov (%p26_p0, %s25_s23), 0  ;;  %s972_s24 = smov (!%p26_p0, %s28_s24), %s818_s21 }
   0x7   : > { %p217_p3 = pnand %p696_p1, %p216_p2  ;;  %p30_p4 = scmp.ge.s32.totalorder %s972_s24, 2 }
   0x8   : > { %p268_p5 = scmp.lt.s32.totalorder (!%p217_p3), %s810_s19, 1  ;;  %p270_p6 = scmp.lt.s32.totalorder (!%p217_p3), %s806_s18, 1 }
   0x9   : > { %s974_s24 = smov (%p30_p4, %s972_s24), 0  ;;  %220 = sbr.rel (%p217_p3) target bundleno = 457 (0x1c9), region = 32 }
   0xa   : > { %s824_s8 = smov (!%p217_p3), 64   ;;  %s825_s9 = smov (!%p217_p3), 63  }
   0xb   : > { %s826_s10 = smov (!%p217_p3), 94   ;;  %s827_s11 = smov (!%p217_p3), 95  }
   0xc   : > { %s828_s12 = smov (!%p217_p3), 96   ;;  %s829_s13 = smov (!%p217_p3), 126  }
   0xd   : > { %s830_s14 = smov (!%p217_p3), 127   ;;  %s831_s15 = smov (!%p217_p3), 62  }
   0xe   : > { %s976_s19 = smov (!%p268_p5, %s810_s19), 1  ;;  %vm405_vm0 = vcmask 515072   ;;  %vm394_vm1 = vcmask 523264   ;;  %vm383_vm2 = vcmask 769024   ;;  %vm372_vm3 = vcmask 777216   ;;  %v421_v31 = vld [vmem:[%s960_s1] sm:$0xff] }
   0xf   : > { %s898_s25 = scalar_select %p270_p6, %s806_s18, 1  ;;  %vm361_vm4 = vcmask 785408   ;;  %v424_v32 = vunpack.c.h.b16 %v421_v31  ;;  %vm416_vm5 = vcmask 506880   ;;  %vm428_vm6 = vcmask 130048   ;;  %v486_v62 = vld [vmem:[%s961_s2] sm:$0x3] }
  0x10   : > { %s735_s26 = smul.u32 12, %s976_s19  ;;  %vm350_vm7 = vcmask 1031168   ;;  %vm339_vm8 = vcmask 1039360   ;;  %v423_v50 = vunpack.c.l.b16 %v421_v31  ;;  %vm497_vm9 = vcmask 7168  }
  0x11   : > { %s734_s27 = smul.u32 6, %s898_s25  ;;  %v426_v39 = vpack.c.b16 %v424_v32, %v424_v32 }
  0x12   : > { %v425_v52 = vpack.c.b16 %v423_v50, %v423_v50 }
  0x13   : > { %s274_s28 = sadd.s32 %s735_s26, %s734_s27  ;;  %s698_s26 = sshll.u32 %s806_s18, 1 }
  0x14   : > { %s697_s29 = sshll.u32 %s274_s28, 2  ;;  %p280_p7 = scmp.lt.s32.totalorder %s698_s26, 3 }
  0x15   : > { %s905_s7 = scalar_lea.vmem %s959_s0, %s697_s29  ;;  %s699_s27 = sshll.u32 %s976_s19, 2 }
  0x16   : > { %v731_v0 = vld [vmem:[%s905_s7 + $0x4] sm:$0xf]  ;;  %v717_v1 = vld [vmem:[%s905_s7 + $0xc] sm:$0xf0]  ;;  %v715_v3 = vld [vmem:[%s905_s7] sm:$0xf] }
  0x17   : > { %v720_v2 = vor.u32 %v731_v0, %v717_v1  ;;  %v732_v4 = vld [vmem:[%s905_s7 + $0x8] sm:$0xf0]  ;;  %v723_v6 = vld [vmem:[%s905_s7 + $0x8] sm:$0xf]  ;;  %v733_v7 = vld [vmem:[%s905_s7 + $0x10] sm:$0xf0] }
  0x18   : > { %v716_v5 = vor.u32 %v732_v4, %v715_v3  ;;  %v724_v8 = vor.u32 %v733_v7, %v723_v6  ;;  %v729_v44 = vld [vmem:[%s905_s7 + $0x4] sm:$0xf]  ;;  %v709_v45 = vld [vmem:[%s905_s7 + $0xc] sm:$0xf0]  ;;  %v707_v53 = vld [vmem:[%s905_s7] sm:$0xf] }
  0x19   : > { %390 = vrot.lane.b32.xlu1 %v720_v2, %s824_s8  ;;  %401 = vrot.lane.b32.xlu0 %v720_v2, %s825_s9  ;;  %v712_v51 = vor.u32 %v729_v44, %v709_v45  ;;  %v730_v54 = vld [vmem:[%s905_s7 + $0x8] sm:$0xf0]  ;;  %s978_s26 = smov (!%p280_p7, %s698_s26), 3  ;;  %v488_v0 = vperm.slane %v486_v62, 0  ;;  %v489_v3 = vperm.slane %v486_v62, 1  ;;  %s701_s18 = sshll.u32 %s976_s19, 1 }
  0x1a   : > { %399 = vrot.lane.b32.xlu2 %v716_v5, %s825_s9  ;;  %v708_v59 = vor.u32 %v730_v54, %v707_v53  ;;  %s283_s28 = sadd.s32 %s699_s27, %s978_s26 }
  0x1b   : > { %s700_s6 = sshll.u32 %s283_s28, 3 }
  0x21   : > { %392 = vrot.lane.b32.xlu1 %v724_v8, %s824_s8  ;;  %403 = vrot.lane.b32.xlu0 %v724_v8, %s825_s9  ;;  %s285_s9 = scalar_lea.vmem %s962_s3, %s700_s6 }
  0x22   : > { %379 = vrot.lane.b32.xlu2 %v720_v2, %s826_s10 }
  0x29   : > { %388 = vrot.lane.b32.xlu1 %v716_v5, %s824_s8  ;;  %381 = vrot.lane.b32.xlu0 %v724_v8, %s826_s10 }
  0x2a   : > { %368 = vrot.lane.b32.xlu2 %v720_v2, %s827_s11 }
  0x31   : > { %377 = vrot.lane.b32.xlu1 %v716_v5, %s826_s10  ;;  %370 = vrot.lane.b32.xlu0 %v724_v8, %s827_s11  ;;  %s292_s10 = sadd.s32 %s701_s18, %s898_s25 }
  0x32   : > { %357 = vrot.lane.b32.xlu2 %v720_v2, %s828_s12 }
  0x39   : > { %366 = vrot.lane.b32.xlu1 %v716_v5, %s827_s11  ;;  %359 = vrot.lane.b32.xlu0 %v724_v8, %s828_s12  ;;  %s702_s11 = sshll.u32 %s292_s10, 3 }
  0x3a   : > { %346 = vrot.lane.b32.xlu2 %v720_v2, %s829_s13  ;;  %s302_s17 = scalar_lea.vmem %s964_s5, %s702_s11 }
  0x41   : > { %355 = vrot.lane.b32.xlu1 %v716_v5, %s828_s12  ;;  %348 = vrot.lane.b32.xlu0 %v724_v8, %s829_s13 }
  0x42   : > { %335 = vrot.lane.b32.xlu2 %v720_v2, %s830_s14 }
  0x49   : > { %344 = vrot.lane.b32.xlu1 %v716_v5, %s829_s13  ;;  %337 = vrot.lane.b32.xlu0 %v724_v8, %s830_s14 }
  0x4a   : > { %412 = vrot.lane.b32.xlu2 %v720_v2, %s831_s15 }
  0x51   : > { %333 = vrot.lane.b32.xlu1 %v716_v5, %s830_s14  ;;  %414 = vrot.lane.b32.xlu0 %v724_v8, %s831_s15  ;;  %s294_s14 = scalar_lea.vmem %s963_s4, %s702_s11 }
  0x52   : > { %410 = vrot.lane.b32.xlu2 %v716_v5, %s831_s15 }
  0x74   : > { %v400_v9 = vpop.permute.xlu2 %399 }
  0x7c   : > { %v380_v10 = vpop.permute.xlu2 %379 }
  0x84   : > { %v369_v11 = vpop.permute.xlu2 %368 }
  0x8b   : > { %v391_v12 = vpop.permute.xlu1 %390  ;;  %v402_v13 = vpop.permute.xlu0 %401 }
  0x8c   : > { %v406_v14 = vsel %vm405_vm0, %v400_v9, %v402_v13  ;;  %v358_v15 = vpop.permute.xlu2 %357 }
  0x8d   : > { %432 = vmatpush.bf16.msra.mxu0 %v406_v14 }
  0x93   : > { %v393_v16 = vpop.permute.xlu1 %392  ;;  %v404_v17 = vpop.permute.xlu0 %403 }
  0x94   : > { %v407_v18 = vsel %vm405_vm0, %v402_v13, %v404_v17  ;;  %v347_v19 = vpop.permute.xlu2 %346  ;;  %v396_v20 = vsel %vm394_vm1, %v391_v12, %v393_v16 }
  0x95   : > { %458 = vmatpush.bf16.msra.mxu2 %v407_v18 }
  0x99   : > { %459 = vmatpush.bf16.msra.mxu2 %v396_v20 }
  0x9b   : > { %v389_v21 = vpop.permute.xlu1 %388  ;;  %v382_v22 = vpop.permute.xlu0 %381 }
  0x9c   : > { %v395_v23 = vsel %vm394_vm1, %v389_v21, %v391_v12  ;;  %v385_v24 = vsel %vm383_vm2, %v380_v10, %v382_v22  ;;  %v336_v25 = vpop.permute.xlu2 %335 }
  0x9d   : > { %433 = vmatpush.bf16.msra.mxu0 %v395_v23  ;;  %460 = vmatpush.bf16.msra.mxu2 %v385_v24 }
  0xa3   : > { %v378_v26 = vpop.permute.xlu1 %377  ;;  %v371_v27 = vpop.permute.xlu0 %370 }
  0xa4   : > { %v384_v28 = vsel %vm383_vm2, %v378_v26, %v380_v10  ;;  %v374_v29 = vsel %vm372_vm3, %v369_v11, %v371_v27  ;;  %v413_v30 = vpop.permute.xlu2 %412 }
  0xa5   : > { %434 = vmatpush.bf16.msra.mxu0 %v384_v28  ;;  %461 = vmatpush.bf16.msra.mxu2 %v374_v29 }
  0xab   : > { %v367_v33 = vpop.permute.xlu1 %366  ;;  %v360_v34 = vpop.permute.xlu0 %359 }
  0xac   : > { %v373_v35 = vsel %vm372_vm3, %v367_v33, %v369_v11  ;;  %v363_v36 = vsel %vm361_vm4, %v358_v15, %v360_v34  ;;  %v411_v37 = vpop.permute.xlu2 %410 }
  0xad   : > { %435 = vmatpush.bf16.msra.mxu0 %v373_v35  ;;  %462 = vmatpush.bf16.msra.mxu2 %v363_v36  ;;  %v417_v38 = vsel %vm416_vm5, %v411_v37, %v413_v30 }
  0xae   : > { %452 = vmatpush.bf16.msra.mxu1 %v417_v38 }
  0xb1   : > { %725 = vmatmul.msk.bf16.vlgmr.msra.gmra.mxu1 %vm428_vm6, %v426_v39 }
  0xb3   : > { %v356_v40 = vpop.permute.xlu1 %355  ;;  %v349_v41 = vpop.permute.xlu0 %348 }
  0xb4   : > { %v362_v42 = vsel %vm361_vm4, %v356_v40, %v358_v15  ;;  %v352_v43 = vsel %vm350_vm7, %v347_v19, %v349_v41 }
  0xb5   : > { %436 = vmatpush.bf16.msra.mxu0 %v362_v42  ;;  %463 = vmatpush.bf16.msra.mxu2 %v352_v43 }
  0xbb   : > { %v345_v46 = vpop.permute.xlu1 %344  ;;  %v338_v47 = vpop.permute.xlu0 %337 }
  0xbc   : > { %v351_v48 = vsel %vm350_vm7, %v345_v46, %v347_v19  ;;  %v341_v49 = vsel %vm339_vm8, %v336_v25, %v338_v47 }
  0xbd   : > { %437 = vmatpush.bf16.msra.mxu0 %v351_v48  ;;  %464 = vmatpush.bf16.msra.mxu2 %v341_v49 }
  0xc1   : > { %465 = vmatpush.bf16.msra.mxu2 %v712_v51 }
  0xc3   : > { %v334_v55 = vpop.permute.xlu1 %333  ;;  %v415_v56 = vpop.permute.xlu0 %414 }
  0xc4   : > { %466 = vmatmul.bf16.vlgmr.msra.gmra.mxu2 %v425_v52  ;;  %v340_v57 = vsel %vm339_vm8, %v334_v55, %v336_v25  ;;  %v418_v58 = vsel %vm416_vm5, %v413_v30, %v415_v56 }
  0xc5   : > { %438 = vmatpush.bf16.msra.mxu0 %v340_v57  ;;  %478 = vmatpush.bf16.msra.mxu3 %v418_v58 }
  0xc8   : > { %726 = vmatmul.msk.bf16.vlgmr.msra.gmra.mxu3 %vm428_vm6, %v426_v39 }
  0xc9   : > { %439 = vmatpush.bf16.msra.mxu0 %v708_v59 }
  0xcc   : > { %440 = vmatmul.bf16.vlgmr.msra.gmra.mxu0 %v425_v52 }
 0x12e   : > { %v454_v60 = vpop.f32.mrf.mxu1 }
 0x136   : > { %v456_v61 = vpop.f32.mrf.mxu1 }
 0x147   : > { %v467_v63 = vpop.f32.mrf.mxu2 }
 0x149   : > { %v441_v1 = vpop.f32.mrf.mxu0 }
 0x14a   : > { %v455_v2 = vadd.f32 %v454_v60, %v441_v1 }
 0x14b   : > { %v480_v4 = vpop.f32.mrf.mxu3 }
 0x14c   : > { %484 = vst [vmem:[%s285_s9] sm:$0xff] %v455_v2  ;;  %v481_v5 = vadd.f32 %v480_v4, %v467_v63  ;;  %v492_v6 = vmul.f32 %v488_v0, %v455_v2 }
 0x14e   : > { %485 = vst [vmem:[%s285_s9 + $0x8] sm:$0xff] %v481_v5  ;;  %v493_v7 = vmul.f32 %v489_v3, %v481_v5  ;;  %v499_v10 = vmul.f32 %v492_v6, %v455_v2 }
 0x14f   : > { %v469_v8 = vpop.f32.mrf.mxu2 }
 0x150   : > { %v494_v9 = vadd.f32 %v493_v7, %v492_v6  ;;  %v500_v11 = vmul.f32 %v493_v7, %v481_v5 }
 0x151   : > { %v443_v12 = vpop.f32.mrf.mxu0 }
 0x152   : > { %495 = vadd.xlane.f32.xlu0 %v494_v9  ;;  %v501_v13 = vadd.f32 %v500_v11, %v499_v10 }
 0x153   : > { %v482_v14 = vpop.f32.mrf.mxu3 }
 0x154   : > { %502 = vadd.xlane.f32.xlu1 %v501_v13 }
 0x1c5   : > { %v496_v15 = vpop.xlane.xlu0 %495 }
 0x1c6   : > { %498 = vst.msk [vmem:[%s294_s14] sm:$0xff] %vm497_vm9, %v496_v15 }
 0x1c7   : > { %v503_v16 = vpop.xlane.xlu1 %502 }
 0x1c8   : > { %504 = vst.msk [vmem:[%s302_s17] sm:$0xff] %vm497_vm9, %v503_v16 }
 0x1c9 PF: > { %s16_s22 = sadd.s32 1, %s822_s22   ;;  %s965_s18 = smov %s814_s20 }
 0x1ca   : > { %p13_p8 = scmp.ge.s32.totalorder %s16_s22, 6   ;;  %s966_s19 = smov %s818_s21 }
 0x1cb   : > { %s967_s20 = smov %s970_s23  ;;  %s968_s21 = smov %s974_s24 }
 0x1cc   :  { %15 = sbr.rel (!%p13_p8) target bundleno = 3 (0x3), region = 86 }

</bundles_post_ra>
